<compile_context>
chip_gen: v7x
topology: tpu7x:2x2x1
jax: 0.10.0
libtpu: 0.0.40
codegen_flags: <defaults>
</compile_context>

<pallas_src>
import math

import jax
import jax.numpy as jnp
from jax.experimental import pallas as pl
from jax.experimental.pallas import tpu as pltpu


# ----------------------------------------------------------------------------
# Sizing helpers (padding-aware, per TPU generation)
# ----------------------------------------------------------------------------

def _round_up(x, m):
    return ((x + m - 1) // m) * m


def _sublane_quantum(dtype):
    # Native (sublane, lane) tile is (8,128) for 32-bit; sub-32-bit dtypes pack
    # along sublanes: (16,128) for bf16, (32,128) for int8/fp8.
    its = int(jnp.dtype(dtype).itemsize)
    return max(8, 32 // max(its, 1))


def _vmem_budgets():
    """Returns (row_block_budget_bytes, vmem_limit_bytes) for this chip."""
    try:
        cap = int(pltpu.get_tpu_info().vmem_capacity_bytes)
    except Exception:
        cap = 64 * 1024 * 1024            # conservative: v7x per-TC VMEM
    block_budget = cap // 3                               # ~21 MiB v7x, ~42 MiB v5e/v6e
    vmem_limit = min((3 * cap) // 4, 96 * 1024 * 1024)    # 48 MiB v7x, 96 MiB v5e/v6e
    return block_budget, vmem_limit


def _pick_row_tile_2d(M, K, N, dtype, budget_bytes):
    """Row tile for the flattened (M, K)->(M, N) MXU path.

    VMEM cost uses the padded layout: each row of the x / out block occupies
    ceil(K/128)*128 / ceil(N/128)*128 lanes, and tm (the sublane dim) must be
    a multiple of the sublane quantum (or equal M).
    """
    sub = _sublane_quantum(dtype)
    its = int(jnp.dtype(dtype).itemsize)
    kp, np_ = _round_up(K, 128), _round_up(N, 128)
    bytes_per_row = 2 * (kp + np_) * its          # double-buffered x + out blocks
    tm = budget_bytes // max(bytes_per_row, 1)
    tm = min(tm, 8192)                            # big-tile regime; diminishing returns beyond
    tm = max(sub, (tm // sub) * sub)
    if tm >= M:
        # Keep >= 2 grid steps so ("parallel",) can shard across v7x's 2 TCs.
        tm = _round_up(pl.cdiv(M, 2), sub) if M > sub else M
    return tm


def _pick_row_tile_3d(M, n_in, n_out, C, dtype, budget_bytes):
    """Row tile for the (M, n_in, C) VPU path (C >= 128).

    tm is a LEADING (untiled) dim here: the (sublane, lane) tile sits on the
    trailing (n_in|n_out, C) dims, which pad to (ceil(n/sub)*sub, ceil(C/128)*128).
    """
    sub = _sublane_quantum(dtype)
    its = int(jnp.dtype(dtype).itemsize)
    cp = _round_up(C, 128)
    bytes_per_row = 2 * (_round_up(n_in, sub) + _round_up(n_out, sub)) * cp * its
    tm = budget_bytes // max(bytes_per_row, 1)
    tm = max(1, min(tm, 4096))
    if tm >= M:
        tm = pl.cdiv(M, 2) if M > 1 else M        # >= 2 grid steps when possible
    return tm


# ----------------------------------------------------------------------------
# Kernels
# ----------------------------------------------------------------------------

def _mxu_kernel(has_bias: bool):
    """Small-C path: one MXU matmul per row tile against the block-diag weight."""

    def kernel(*refs):
        if has_bias:
            x_ref, w_ref, b_ref, o_ref = refs
        else:
            x_ref, w_ref, o_ref = refs
        # x_ref: (tm, K)   w_ref: (K, N)   b_ref: (1, N)   o_ref: (tm, N)
        acc = jnp.dot(x_ref[...], w_ref[...], preferred_element_type=jnp.float32)
        if has_bias:
            acc = acc + b_ref[...].astype(jnp.float32)    # broadcasts over rows
        o_ref[...] = acc.astype(o_ref.dtype)

    return kernel


def _vpu_kernel(n_in: int, has_bias: bool):
    """Large-C path: channels on lanes, unrolled VPU MAC over the tiny n_in axis."""

    def kernel(*refs):
        if has_bias:
            x_ref, w_ref, b_ref, o_ref = refs
        else:
            x_ref, w_ref, o_ref = refs
        # x_ref: (tm, n_in, C)  w_ref: (n_out, n_in, C)  b_ref: (n_out, C)
        w = w_ref[...].astype(jnp.float32)                        # resident, tiny
        # Start the accumulator from the first term -- no zeros / broadcast pass.
        acc = x_ref[:, 0:1, :].astype(jnp.float32) * w[None, :, 0, :]
        for i in range(1, n_in):
            acc = acc + x_ref[:, i:i + 1, :].astype(jnp.float32) * w[None, :, i, :]
        if has_bias:
            acc = acc + b_ref[...].astype(jnp.float32)[None, :, :]
        o_ref[...] = acc.astype(o_ref.dtype)                      # lane-dense store

    return kernel


# ----------------------------------------------------------------------------
# Wrappers
# ----------------------------------------------------------------------------

def _channel_linear_small_c(x, weight, bias):
    B, S, n_in, C = x.shape
    n_out = weight.shape[0]
    M, K, N = B * S, n_in * C, n_out * C
    has_bias = bias is not None

    # Block-diagonal weight: Wbd[i*C+c, o*C+c] = weight[o, i, c] (tiny K x N).
    w_t = jnp.transpose(weight, (1, 2, 0))                     # (n_in, C, n_out)
    eye = jnp.eye(C, dtype=weight.dtype)
    w_bd = jnp.einsum('ico,cd->icod', w_t, eye).reshape(K, N)

    x2 = x.reshape(M, K)                                       # free, row-major
    budget, vmem_limit = _vmem_budgets()
    tm = _pick_row_tile_2d(M, K, N, x.dtype, budget)
    grid = (pl.cdiv(M, tm),)

    in_specs = [
        pl.BlockSpec((tm, K), lambda m: (m, 0)),               # x row tile
        pl.BlockSpec((K, N), lambda m: (0, 0)),                # Wbd: VMEM-resident
    ]
    args = [x2, w_bd]
    if has_bias:
        in_specs.append(pl.BlockSpec((1, N), lambda m: (0, 0)))   # bias: resident
        args.append(bias.reshape(1, N))

    out2 = pl.pallas_call(
        _mxu_kernel(has_bias),
        out_shape=jax.ShapeDtypeStruct((M, N), x.dtype),
        grid=grid,
        in_specs=in_specs,
        out_specs=pl.BlockSpec((tm, N), lambda m: (m, 0)),
        compiler_params=pltpu.CompilerParams(
            dimension_semantics=("parallel",),                 # shard M across cores
            vmem_limit_bytes=vmem_limit,
        ),
    )(*args)
    return out2.reshape(B, S, n_out, C)                        # free reshape


def _channel_linear_large_c(x, weight, bias):
    B, S, n_in, C = x.shape
    n_out = weight.shape[0]
    M = B * S
    has_bias = bias is not None

    x3 = x.reshape(M, n_in, C)                                 # free, row-major
    budget, vmem_limit = _vmem_budgets()
    tm = _pick_row_tile_3d(M, n_in, n_out, C, x.dtype, budget)
    grid = (pl.cdiv(M, tm),)

    in_specs = [
        pl.BlockSpec((tm, n_in, C), lambda m: (m, 0, 0)),      # x row tile
        pl.BlockSpec((n_out, n_in, C), lambda m: (0, 0, 0)),   # weight: resident
    ]
    args = [x3, weight]
    if has_bias:
        in_specs.append(pl.BlockSpec((n_out, C), lambda m: (0, 0)))  # bias: resident
        args.append(bias)

    out3 = pl.pallas_call(
        _vpu_kernel(n_in, has_bias),
        out_shape=jax.ShapeDtypeStruct((M, n_out, C), x.dtype),
        grid=grid,
        in_specs=in_specs,
        out_specs=pl.BlockSpec((tm, n_out, C), lambda m: (m, 0, 0)),
        compiler_params=pltpu.CompilerParams(
            dimension_semantics=("parallel",),
            vmem_limit_bytes=vmem_limit,
        ),
    )(*args)
    return out3.reshape(B, S, n_out, C)                        # free reshape


def channel_linear(x, weight, bias=None):
    """x: [B, S, n_in, C]; weight: [n_out, n_in, C]; bias: [n_out, C] or None.

    Returns [B, S, n_out, C]  (== torch.einsum('bsic,oic->bsoc') + bias).
    """
    _, _, n_in, C = x.shape
    n_out = weight.shape[0]
    its = int(jnp.dtype(x.dtype).itemsize)
    # Padded footprint of the block-diagonal weight; only huge n_in/n_out can
    # make it too big, in which case fall back to the lane-layout path.
    wbd_bytes = _round_up(n_in * C, 128) * _round_up(n_out * C, 128) * its
    if C >= 128 or wbd_bytes > 8 * 1024 * 1024:
        return _channel_linear_large_c(x, weight, bias)        # lane-dense VPU path
    return _channel_linear_small_c(x, weight, bias)            # MXU block-diag path


def init_channel_linear_params(key, n_channels, n_in, n_out, bias_flag=True,
                               dtype=jnp.float32):
    """Mirrors ChannelLinear.reset_parameters(): kaiming_uniform_(a=sqrt(5)) on
    weight (n_out, n_in, n_channels) -> bound = 1/sqrt(fan_in) with
    fan_in = n_in * n_channels; bias uniform in [-bound, bound]."""
    kw, kb = jax.random.split(key)
    fan_in = n_in * n_channels
    bound = 1.0 / math.sqrt(fan_in)
    weight = jax.random.uniform(
        kw, (n_out, n_in, n_channels), dtype, minval=-bound, maxval=bound)
    if bias_flag:
        bias = jax.random.uniform(
            kb, (n_out, n_channels), dtype, minval=-bound, maxval=bound)
    else:
        bias = None
    return weight, bias


if __name__ == "__main__":
    key = jax.random.PRNGKey(0)
    k_x, k_p, k_x2, k_p2 = jax.random.split(key, 4)

    # ---- Small-C regime (the dag-learner shape): MXU block-diagonal path ----
    B, S, n_in, n_out, C = 2, 8, 4, 6, 4
    x = jax.random.normal(k_x, (B, S, n_in, C), dtype=jnp.float32)
    weight, bias = init_channel_linear_params(k_p, C, n_in, n_out, bias_flag=True)

    out = jax.block_until_ready(channel_linear(x, weight, bias))
    ref = jnp.einsum('bsic,oic->bsoc', x, weight) + bias[None, None, :, :]
    assert out.shape == (B, S, n_out, C)
    assert jnp.allclose(out, ref, atol=1e-5, rtol=1e-5)

    # No-bias specialization (no zeros tensor, no bias DMA)
    out_nb = jax.block_until_ready(channel_linear(x, weight, None))
    ref_nb = jnp.einsum('bsic,oic->bsoc', x, weight)
    assert jnp.allclose(out_nb, ref_nb, atol=1e-5, rtol=1e-5)

    # ---- Large-C regime: lane-dense VPU path behind the C >= 128 guard ----
    B2, S2, n_in2, n_out2, C2 = 1, 16, 3, 5, 128
    x2 = jax.random.normal(k_x2, (B2, S2, n_in2, C2), dtype=jnp.float32)
    w2, b2 = init_channel_linear_params(k_p2, C2, n_in2, n_out2, bias_flag=True)
    out2 = jax.block_until_ready(channel_linear(x2, w2, b2))
    ref2 = jnp.einsum('bsic,oic->bsoc', x2, w2) + b2[None, None, :, :]
    assert out2.shape == (B2, S2, n_out2, C2)
    assert jnp.allclose(out2, ref2, atol=1e-4, rtol=1e-4)

    print("KERNEL_OK")
</pallas_src>

<mosaic_0001>
module attributes {stable_mosaic.version = 11 : i64} {
  func.func @kernel(%arg0: i32, %arg1: memref<8x16xf32, #tpu.memory_space<vmem>>, %arg2: memref<16x24xf32, #tpu.memory_space<vmem>>, %arg3: memref<1x24xf32, #tpu.memory_space<vmem>>, %arg4: memref<8x24xf32, #tpu.memory_space<vmem>>) attributes {dimension_semantics = [#tpu.dimension_semantics<parallel>], iteration_bounds = array<i64: 2>, scalar_prefetch = 0 : i64, scratch_operands = 0 : i64, tpu.core_type = #tpu.core_type<tc>, window_params = [{transform_indices = @transform_0, window_bounds = array<i64: 8, 16>}, {pipeline_mode = #tpu.pipeline_mode<synchronous>, transform_indices = @transform_1, window_bounds = array<i64: 16, 24>}, {pipeline_mode = #tpu.pipeline_mode<synchronous>, transform_indices = @transform_2, window_bounds = array<i64: 1, 24>}, {transform_indices = @transform_3, window_bounds = array<i64: 8, 24>}]} {
    %c0 = arith.constant 0 : index
    %c0_0 = arith.constant 0 : index
    %0 = vector.load %arg1[%c0, %c0_0] : memref<8x16xf32, #tpu.memory_space<vmem>>, vector<8x16xf32>
    %c0_1 = arith.constant 0 : index
    %c0_2 = arith.constant 0 : index
    %1 = vector.load %arg2[%c0_1, %c0_2] : memref<16x24xf32, #tpu.memory_space<vmem>>, vector<16x24xf32>
    %cst = arith.constant dense<0.000000e+00> : vector<8x24xf32>
    %2 = tpu.matmul %0, %1, %cst {dimension_numbers = #tpu.dot_dimension_numbers<[1], [0], [0], [1], [0, 0, 1, 1], [], []>} : vector<8x16xf32>, vector<16x24xf32>, vector<8x24xf32> -> vector<8x24xf32>
    %c0_3 = arith.constant 0 : index
    %c0_4 = arith.constant 0 : index
    %3 = vector.load %arg3[%c0_3, %c0_4] : memref<1x24xf32, #tpu.memory_space<vmem>>, vector<1x24xf32>
    %4 = vector.broadcast %3 : vector<1x24xf32> to vector<8x24xf32>
    %5 = arith.addf %2, %4 : vector<8x24xf32>
    %c0_5 = arith.constant 0 : index
    %c0_6 = arith.constant 0 : index
    %6 = vector.load %arg4[%c0_5, %c0_6] : memref<8x24xf32, #tpu.memory_space<vmem>>, vector<8x24xf32>
    tpu.vector_store %arg4[%c0_5, %c0_6], %5 {strides = array<i32>} : memref<8x24xf32, #tpu.memory_space<vmem>>, vector<8x24xf32>,
    return
  }
  func.func @transform_0(%arg0: i32) -> (i32, i32) {
    %c0_i32 = arith.constant 0 : i32
    %c0_i32_0 = arith.constant 0 : i32
    return %arg0, %c0_i32 : i32, i32
  }
  func.func @transform_1(%arg0: i32) -> (i32, i32) {
    %c0_i32 = arith.constant 0 : i32
    %c0_i32_0 = arith.constant 0 : i32
    %c0_i32_1 = arith.constant 0 : i32
    return %c0_i32, %c0_i32_0 : i32, i32
  }
  func.func @transform_2(%arg0: i32) -> (i32, i32) {
    %c0_i32 = arith.constant 0 : i32
    %c0_i32_0 = arith.constant 0 : i32
    %c0_i32_1 = arith.constant 0 : i32
    return %c0_i32, %c0_i32_0 : i32, i32
  }
  func.func @transform_3(%arg0: i32) -> (i32, i32) {
    %c0_i32 = arith.constant 0 : i32
    %c0_i32_0 = arith.constant 0 : i32
    return %arg0, %c0_i32 : i32, i32
  }
}

</mosaic_0001>

<bundles_post_ra>
// kernel: tpu_custom_call.1
= control target key start
LH: loop header
LB: loop body
LE: loop exit
PB: predicated region body
PF: predicated region fallthrough
CT: control target
= control target key end

     0   :  { %8 = vsyncpa [#allocation3], 0  ;;  %s829_s0 = inlined_call_operand.hbm [shape: f32[16,16], index: 0, kind: input, shape index: {}]   ;;  %s830_s1 = inlined_call_operand.hbm [shape: f32[16,24], index: 1, kind: input, shape index: {}]   ;;  %s831_s2 = inlined_call_operand.vmem [shape: f32[1,24], index: 2, kind: input, shape index: {}]   ;;  %s832_s3 = inlined_call_operand.hbm [shape: f32[16,24], index: 3, kind: output, shape index: {}]  }
   0x1   :  { %10 = vsyncpa [#allocation3 + $0x1], 0 }
   0x2   :  { %11 = vsyncpa [#allocation6], 0 }
   0x3   :  { %12 = vsyncpa [#allocation4], 0 }
   0x4   :  { %14 = vsyncpa [#allocation4 + $0x1], 0  ;;  %s630_s12 = smov 0   ;;  %s632_s13 = smov 0  }
   0x5   :  { %s634_s14 = smov 0   ;;  %s636_s15 = smov 0  }
   0x6 LB: > { %s651_s16 = sadd.s32 4294967295, %s600_s15   ;;  %s381_s17 = sadd.s32 4294967294, %s600_s15   ;;  %s600_s15 = sphi %s636_s15, %s852_s15   ;;  %s596_s14 = sphi %s634_s14, %s851_s14   ;;  %s592_s13 = sphi %s632_s13, %s850_s13   ;;  %s588_s12 = sphi %s630_s12, %s849_s12  }
   0x7   : > { %p40_p0 = scmp.ne.s32.totalorder %s592_s13, %s588_s12  ;;  %p833_p1 = scmp.eq.s32.totalorder %s651_s16, 0 }
   0x8   : > { %p112_p3 = scmp.eq.s32.totalorder %s381_s17, 1  ;;  %p382_p5 = scmp.ge.s32.totalorder %s600_s15, 1 }
   0x9   : > { %p660_p4 = por %p833_p1, %p40_p0  ;;  %p119_p7 = scmp.lt.s32.totalorder %s600_s15, 3 }
   0xa   : > { %p665_p6 = por %p112_p3, %p40_p0  ;;  %s602_s21 = smov [#allocation5]  }
   0xb   : > { %s836_s18 = scalar_select %p660_p4, 1, 0 }
   0xc   : > { %s837_s19 = scalar_select %p665_p6, 1, 0 }
   0xd   : > { %p670_p8 = pnand %p382_p5, %p119_p7  ;;  %s131_s22 = sshll.u32 %s602_s21, 4  ;;  %s674_s22 = int_to_ptr.vmem [resolvable:$true] %s131_s22 }
   0xe   : > { %s686_s24 = sadd.s32 1, %s600_s15   ;;  %s27_s25 = sadd.s32 1, %s596_s14 }
   0xf   : > { %s838_s20 = scalar_select %p670_p8, 1, 0 }
  0x10   : > { %p418_p9 = pneg %p670_p8  ;;  %s24_s26 = ssub.s32 %s600_s15, %s686_s24 }
  0x11   : > { %s472_s29 = scalar_lea.hbm %s830_s1, 256 }
  0x12   : > { %p681_p11 = pnand %p418_p9, %p833_p1  ;;  %p473_p12 = scmp.ne.s32.totalorder %s830_s1, %s472_s29 }
  0x13   : > { %p479_p5 = scmp.lt.u32.totalorder %s472_s29, %s830_s1 }
  0x14   : > { %p474_p13 = pneg %p681_p11 }
  0x16   : > { %p475_p0 = pnand %p474_p13, %p473_p12 }
  0x18   : > { %p476_p3 = pneg %p475_p0 }
  0x1a   : > { %p481_p7 = pnand %p479_p5, %p476_p3 }
  0x1c   : > { %484 = shalt.err (!%p481_p7)
}
  0x1d   : > { %s485_s7 = scalar_lea.vmem %s674_s22, 256  ;;  %p493_p2 = scmp.lt.s32.totalorder %s674_s22, %s674_s22 }
  0x1e   : > { %p486_p9 = scmp.ne.s32.totalorder %s674_s22, %s485_s7  ;;  %p494_p6 = scmp.lt.s32.totalorder %s485_s7, %s485_s7 }
  0x20   : > { %p488_p10 = pnand %p486_p9, %p474_p13  ;;  %p495_p4 = por %p494_p6, %p493_p2 }
  0x22   : > { %p489_p1 = pneg %p488_p10 }
  0x24   : > { %p496_p8 = pnand %p495_p4, %p489_p1 }
  0x26   : > { %499 = shalt.err (!%p496_p8)
}
  0x27   : > { %s603_s8 = smov 128   ;;  %s604_s9 = smov 8  }
  0x28   : > { %421 = dma.hbm_to_vmem [thread:$0]  (!%p681_p11), %s830_s1, 256, %s674_s22, [#allocation6], %s603_s8, %s603_s8, %s604_s9  }
  0x29   : > { %p25_p2 = scmp.eq.s32.totalorder %s24_s26, 0  ;;  %p34_p1 = scmp.ne.s32.totalorder %s596_s14, %s592_s13 }
  0x2a   : > { %p35_p4 = scmp.eq.s32.totalorder %s600_s15, 0  ;;  %p431_p6 = scmp.lt.s32.totalorder %s600_s15, 2 }
  0x2b   : > { %s717_s17 = scalar_select %p25_p2, %s596_s14, %s27_s25  }
  0x2c   : > { %p36_p8 = por %p35_p4, %p34_p1  ;;  %p840_p10 = scmp.eq.s32.totalorder %s651_s16, 1 }
  0x2d   : > { %s148_s27 = sand.u32 1, %s596_s14   ;;  %s386_s28 = sshll.u32 %s600_s15, 7 }
  0x2e   : > { %p721_p12 = por %p840_p10, %p34_p1  ;;  %s385_s29 = sshll.u32 %s148_s27, 3 }
  0x2f   : > { %s730_s4 = scalar_lea.hbm %s829_s0, %s386_s28  ;;  %s152_s22 = scalar_lea.vmem [#allocation2], %s385_s29 }
  0x30   : > { %s159_s25 = sshll.u32 %s152_s22, 4  ;;  %p732_p11 = pnand %p431_p6, %p36_p8  ;;  %s736_s25 = int_to_ptr.vmem [resolvable:$true] %s159_s25 }
  0x31   : > { %s149_s5 = scalar_lea.sflag [#allocation3], %s148_s27  ;;  %s500_s6 = scalar_lea.hbm %s730_s4, 128 }
  0x32   : > { %p501_p13 = scmp.ne.s32.totalorder %s730_s4, %s500_s6  ;;  %p502_p0 = pneg %p732_p11 }
  0x33   : > { %s505_s9 = scalar_lea.hbm %s829_s0, 256  ;;  %p506_p7 = scmp.lt.u32.totalorder %s730_s4, %s829_s0 }
  0x34   : > { %p503_p3 = pnand %p502_p0, %p501_p13  ;;  %p507_p9 = scmp.lt.u32.totalorder %s505_s9, %s500_s6 }
  0x35   : > { %p509_p1 = scmp.lt.u32.totalorder %s500_s6, %s730_s4 }
  0x36   : > { %p504_p5 = pneg %p503_p3  ;;  %p508_p2 = por %p507_p9, %p506_p7 }
  0x38   : > { %p510_p4 = por %p509_p1, %p508_p2 }
  0x3a   : > { %p511_p6 = pnand %p510_p4, %p504_p5 }
  0x3c   : > { %514 = shalt.err (!%p511_p6)
}
  0x3d   : > { %s515_s27 = scalar_lea.vmem %s736_s25, 128  ;;  %s605_s28 = smov [#allocation2]  }
  0x3e   : > { %p516_p8 = scmp.ne.s32.totalorder %s736_s25, %s515_s27  ;;  %s520_s29 = sshll.u32 %s605_s28, 4  ;;  %s521_s29 = int_to_ptr.vmem [resolvable:$false] %s520_s29 }
  0x3f   : > { %s522_s23 = scalar_lea.vmem %s521_s29, 256  ;;  %p523_p3 = scmp.lt.s32.totalorder %s736_s25, %s521_s29 }
  0x40   : > { %p518_p10 = pnand %p516_p8, %p502_p0  ;;  %p524_p7 = scmp.lt.s32.totalorder %s522_s23, %s515_s27 }
  0x42   : > { %p519_p13 = pneg %p518_p10  ;;  %p525_p9 = por %p524_p7, %p523_p3 }
  0x44   : > { %p526_p2 = pnand %p525_p9, %p519_p13 }
  0x46   : > { %529 = shalt.err (!%p526_p2)
}
  0x47   : > { %425 = dma.hbm_to_vmem [thread:$0]  (!%p732_p11), %s730_s4, 128, %s736_s25, %s149_s5  }
  0x48   : > { %p843_p5 = scmp.ne.s32.totalorder %s838_s20, 0 }
  0x49   : > { %s766_s30 = sand.u32 (!%p843_p5), 1, %s592_s13   ;;  %p844_p0 = scmp.ne.s32.totalorder (!%p843_p5), %s836_s18, 0 }
  0x4a   : > { %168 = sbr.rel (%p843_p5) target bundleno = 319 (0x13f), region = 32  ;;  %s388_s22 = sshll.u32 (!%p843_p5), %s766_s30, 3 }
  0x4b   : > { %s171_s6 = scalar_lea.sflag (!%p843_p5), [#allocation3], %s766_s30  ;;  %s174_s7 = scalar_lea.vmem (!%p843_p5), [#allocation2], %s388_s22 }
  0x51   : > { %575 = dma.done.wait (%p844_p0), %s171_s6, 128  }
  0x52   : > { %577 = vsyncadd (%p844_p0), %s171_s6, 4294967168  ;;  %p845_p1 = scmp.eq.s32.totalorder %s651_s16, 0 }
  0x54   : > { %579 = dma.done.wait (%p845_p1), [#allocation6], 256   ;;  %p846_p11 = pmov %p845_p1 }
  0x55   : > { %v606_v0 = vmov 0.0|0.0   ;;  %vm607_vm0 = vmmov 0   ;;  %v608_v1 = vmov 0.0   ;;  %v202_v2 = vld [vmem:[#allocation5] sm:$0xff]  ;;  %v203_v3 = vld [vmem:[#allocation5 + $0x8] sm:$0xff]  ;;  %v201_v5 = vld [vmem:[%s174_s7] sm:$0xff] }
  0x56   : > { %581 = vsyncadd (%p846_p11), [#allocation6], 4294967040  ;;  %407 = vmatprep.subr.bf16.mxu0 %v606_v0  ;;  %404 = vmatprep.mubr.msk.f32.mxu0 %vm607_vm0, %v608_v1  ;;  %v408_v4 = vpack.c.bf16 %v203_v3, %v202_v2  ;;  %vm211_vm1 = vcmask 130048   ;;  %v391_v6 = vld [vmem:[%s831_s2] ss:$0 sm:$0xff]  ;;  %s394_s4 = sshll.u32 %s651_s16, 7 }
  0x57   : > { %s200_s25 = scalar_lea.vmem [#allocation7], %s388_s22  ;;  %vm285_vm2 = vcmask 195584   ;;  %s785_s9 = scalar_lea.hbm %s832_s3, %s394_s4 }
  0x58   : > { %409 = vmatpush3.bf16.msra.mxu0 %v408_v4  ;;  %s301_s26 = sshll.u32 %s200_s25, 4  ;;  %s288_s10 = scalar_lea.sflag [#allocation4], %s766_s30  ;;  %s787_s26 = int_to_ptr.vmem [resolvable:$true] %s301_s26 }
  0x59   : > { %s530_s11 = scalar_lea.vmem %s787_s26, 128  ;;  %s609_s16 = smov [#allocation7]  }
  0x5a   : > { %p531_p4 = scmp.ne.s32.totalorder %s787_s26, %s530_s11  ;;  %s534_s27 = sshll.u32 %s609_s16, 4  ;;  %s535_s27 = int_to_ptr.vmem [resolvable:$false] %s534_s27 }
  0x5b   : > { %405 = vmatmul.mubr.msk.f32.vlgmr.msra.gmra.mrb[0].mxu0 %vm211_vm1, %v201_v5  ;;  %s536_s28 = scalar_lea.vmem %s535_s27, 256  ;;  %p537_p10 = scmp.lt.s32.totalorder %s787_s26, %s535_s27 }
  0x5c   : > { %p532_p6 = pnand %p531_p4, %p721_p12  ;;  %p538_p13 = scmp.lt.s32.totalorder %s536_s28, %s530_s11 }
  0x5e   : > { %p533_p8 = pneg %p532_p6  ;;  %p539_p3 = por %p538_p13, %p537_p10 }
  0x60   : > { %p540_p7 = pnand %p539_p3, %p533_p8 }
 0x12e   : > { %v281_v7 = vpop.f32.mrb[0].mxu0 }
 0x12f   : > { %v282_v8 = vadd.f32 %v391_v6, %v281_v7  ;;  %v406_v9 = vpop.f32.mrb[1].mxu0 }
 0x131   : > { %286 = vst.msk [vmem:[%s200_s25] sm:$0xff] %vm285_vm2, %v282_v8 }
 0x132   : > { %543 = shalt.err (!%p540_p7)
}
 0x133   : > { %s544_s29 = scalar_lea.hbm %s785_s9, 128  ;;  %s548_s22 = scalar_lea.hbm %s832_s3, 256 }
 0x134   : > { %p545_p9 = scmp.ne.s32.totalorder %s785_s9, %s544_s29  ;;  %p549_p0 = scmp.lt.u32.totalorder %s785_s9, %s832_s3 }
 0x135   : > { %p550_p1 = scmp.lt.u32.totalorder %s548_s22, %s544_s29  ;;  %p552_p4 = scmp.lt.u32.totalorder %s544_s29, %s785_s9 }
 0x136   : > { %p546_p2 = pnand %p545_p9, %p721_p12 }
 0x137   : > { %p551_p11 = por %p550_p1, %p549_p0 }
 0x138   : > { %p547_p5 = pneg %p546_p2 }
 0x139   : > { %p553_p6 = por %p552_p4, %p551_p11 }
 0x13b   : > { %p554_p8 = pnand %p553_p6, %p547_p5 }
 0x13d   : > { %557 = shalt.err (!%p554_p8)
}
 0x13e   : > { %416 = dma.vmem_to_hbm [thread:$0]  (%p721_p12), %s787_s26, 128, %s785_s9, %s288_s10  }
 0x13f PF: > { %s313_s18 = sand.u32 1, %s588_s12   ;;  %p847_p10 = scmp.ne.s32.totalorder %s837_s19, 0 }
 0x140   : > { %p848_p13 = scmp.ge.s32.totalorder %s600_s15, 2  ;;  %s314_s20 = scalar_lea.sflag [#allocation4], %s313_s18 }
 0x142   : > { %p427_p3 = pnand %p848_p13, %p847_p10 }
 0x144   : > { %583 = dma.done.wait (!%p427_p3), %s314_s20, 128  }
 0x145   : > { %585 = vsyncadd (!%p427_p3), %s314_s20, 4294967168  ;;  %p17_p7 = scmp.ge.s32.totalorder %s686_s24, 4   ;;  %s849_s12 = smov %s592_s13 }
 0x146   : > { %s850_s13 = smov %s596_s14  ;;  %s851_s14 = smov %s717_s17 }
 0x147   : > { %s852_s15 = smov %s686_s24  ;;  %19 = sbr.rel (!%p17_p7) target bundleno = 6 (0x6), region = 81 }
 0x14e   :  { %319 = vsyncpa [#allocation3], 1 }
 0x14f   :  { %321 = vsyncpa [#allocation3 + $0x1], 1 }
 0x150   :  { %322 = vsyncpa [#allocation6], 1 }
 0x151   :  { %323 = vsyncpa [#allocation4], 1 }
 0x152   :  { %325 = vsyncpa [#allocation4 + $0x1], 1 }

</bundles_post_ra>
